<compile_context>
chip_gen: v5e
topology: v5e:2x2
jax: 0.10.0
libtpu: 0.0.40
codegen_flags: <defaults>
</compile_context>

<pallas_src>
import functools

import jax
import jax.numpy as jnp
from jax import lax
from jax.experimental import pallas as pl
from jax.experimental.pallas import tpu as pltpu


# ----------------------------------------------------------------------------
# Kernel
# ----------------------------------------------------------------------------
def _lane_chunk(thw):
    """Largest 'nice' lane chunk (<=512) that divides the tile width."""
    for c in (512, 256, 128):
        if thw % c == 0:
            return c
    return thw


def _attention_kernel(x_ref, y_ref, w1_ref, b1_ref, w2_ref, b2_ref, o_ref):
    # x_ref, y_ref, o_ref : (1, C, thw) tiles (channels on sublanes, spatial on lanes)
    # w1_ref, w2_ref      : (C, C) BN-folded 1x1 conv weights (out-ch x in-ch), f32
    # b1_ref, b2_ref      : (C, 1) BN-folded biases (broadcast along lanes), f32
    thw = o_ref.shape[2]
    chunk = _lane_chunk(thw)
    nchunks = thw // chunk

    w1 = w1_ref[...]
    w2 = w2_ref[...]
    b1 = b1_ref[...]
    b2 = b2_ref[...]

    def body(i, carry):
        start = pl.multiple_of(i * chunk, chunk)
        xs = x_ref[0, :, pl.ds(start, chunk)].astype(jnp.float32)   # (C, chunk)
        ys = y_ref[0, :, pl.ds(start, chunk)].astype(jnp.float32)

        a = jnp.dot(w1, xs, preferred_element_type=jnp.float32) + b1
        a = jnp.maximum(a, 0.0)                                      # relu(bn1(conv1(x)))
        b = jnp.dot(w2, ys, preferred_element_type=jnp.float32) + b2
        b = jnp.maximum(b, 0.0)                                      # relu(bn2(conv2(y)))

        o_ref[0, :, pl.ds(start, chunk)] = jnp.tanh(a * b).astype(o_ref.dtype)
        return carry

    lax.fori_loop(0, nchunks, body, 0, unroll=True)


# ----------------------------------------------------------------------------
# Host-side helpers
# ----------------------------------------------------------------------------
def _fold_bn(conv_w, conv_b, gamma, beta, running_mean, running_var, eps=1e-5):
    """Fold eval-mode BatchNorm into a 1x1 conv.  conv_w: (C_out, C_in)."""
    scale = gamma / jnp.sqrt(running_var + eps)              # (C_out,)
    shift = beta - running_mean * scale                      # (C_out,)
    w_folded = conv_w * scale[:, None]                       # (C_out, C_in)
    b_folded = conv_b * scale + shift                        # (C_out,)
    return w_folded, b_folded


def _tpu_vmem_capacity_bytes():
    """Physical VMEM capacity (64 MiB on v7x, 128 MiB on v5e/v6e)."""
    try:
        return int(pltpu.get_tpu_info().vmem_capacity_bytes)
    except Exception:
        return 128 << 20                                      # conservative fallback


def _choose_tile_hw(C, HW, B, in_itemsize, out_itemsize, vmem_cap):
    """Largest lane-dense spatial tile under a generation-aware VMEM budget."""
    if HW <= 128:
        return HW                                             # full (lane) dim

    # Budget for the double-buffered x/y/out blocks.
    block_budget = (24 << 20) if vmem_cap <= (64 << 20) else (48 << 20)
    # The full (C,C) f32 weights are double-buffered too; subtract them.
    weight_bytes = 2 * 2 * C * C * 4
    block_budget = max(4 << 20, block_budget - weight_bytes)

    per_col = 2 * (2 * in_itemsize + out_itemsize) * C        # 2 bufs x (x, y, out)
    max_cols = block_budget // per_col
    thw = int(min(HW, 8192, max_cols))
    thw = max(128, (thw // 128) * 128)                        # multiple of 128

    # Guarantee >= 2 grid programs so both v7x TensorCores get work.
    if B == 1 and thw >= HW:
        thw = max(128, ((HW // 2) // 128) * 128)
    return thw


def _vmem_limit_bytes(C, thw, in_itemsize, out_itemsize, vmem_cap):
    blocks = 2 * (2 * C * thw * in_itemsize + C * thw * out_itemsize)
    weights = 2 * 2 * (C * C * 4 + C * 4)
    needed = blocks + weights + (4 << 20)                     # compiler scratch margin
    return int(min(max(needed, 32 << 20), (vmem_cap * 3) // 4))


@functools.partial(jax.jit, static_argnames=("thw", "vmem_limit", "out_dtype"))
def _attention_impl(x, y, params, *, thw, vmem_limit, out_dtype):
    B, C, H, W = x.shape
    HW = H * W
    odt = jnp.dtype(out_dtype)

    w1, b1 = _fold_bn(params["conv1_w"], params["conv1_b"],
                      params["bn1_gamma"], params["bn1_beta"],
                      params["bn1_mean"], params["bn1_var"])
    w2, b2 = _fold_bn(params["conv2_w"], params["conv2_b"],
                      params["bn2_gamma"], params["bn2_beta"],
                      params["bn2_mean"], params["bn2_var"])
    w1 = w1.astype(jnp.float32)
    w2 = w2.astype(jnp.float32)
    b1 = b1.reshape(C, 1).astype(jnp.float32)
    b2 = b2.reshape(C, 1).astype(jnp.float32)

    # Zero-copy reshape: channels on sublanes, spatial on lanes.
    x3 = x.reshape(B, C, HW)
    y3 = y.reshape(B, C, HW)

    grid = (B, pl.cdiv(HW, thw))

    in_isz = jnp.dtype(x.dtype).itemsize
    out_isz = odt.itemsize
    cost = pl.CostEstimate(
        flops=4 * B * HW * C * C,                             # two (C,C)@(C,HW) matmuls
        transcendentals=B * HW * C,                           # tanh
        bytes_accessed=(2 * in_isz + out_isz) * B * C * HW + 8 * C * C + 8 * C,
    )

    out3 = pl.pallas_call(
        _attention_kernel,
        out_shape=jax.ShapeDtypeStruct((B, C, HW), odt),
        grid_spec=pltpu.PrefetchScalarGridSpec(
            num_scalar_prefetch=0,
            grid=grid,
            in_specs=[
                pl.BlockSpec((1, C, thw), lambda b, j: (b, 0, j)),   # x tile
                pl.BlockSpec((1, C, thw), lambda b, j: (b, 0, j)),   # y tile
                pl.BlockSpec((C, C), lambda b, j: (0, 0)),           # folded W1
                pl.BlockSpec((C, 1), lambda b, j: (0, 0)),           # folded b1
                pl.BlockSpec((C, C), lambda b, j: (0, 0)),           # folded W2
                pl.BlockSpec((C, 1), lambda b, j: (0, 0)),           # folded b2
            ],
            out_specs=pl.BlockSpec((1, C, thw), lambda b, j: (b, 0, j)),
        ),
        compiler_params=pltpu.CompilerParams(
            dimension_semantics=("parallel", "parallel"),
            vmem_limit_bytes=vmem_limit,
        ),
        cost_estimate=cost,
    )(x3, y3, w1, b1, w2, b2)

    return out3.reshape(B, C, H, W)


def attention_layer(x, y, params, out_dtype=None):
    """x, y: (B, C, H, W) float32 or bfloat16 (NCHW, same layout as PyTorch)."""
    B, C, H, W = x.shape
    HW = H * W
    odt = jnp.dtype(out_dtype) if out_dtype is not None else jnp.dtype(x.dtype)

    vmem_cap = _tpu_vmem_capacity_bytes()
    in_isz = jnp.dtype(x.dtype).itemsize
    out_isz = odt.itemsize
    thw = _choose_tile_hw(C, HW, B, in_isz, out_isz, vmem_cap)
    vmem_limit = _vmem_limit_bytes(C, thw, in_isz, out_isz, vmem_cap)

    return _attention_impl(x, y, params, thw=thw, vmem_limit=vmem_limit,
                           out_dtype=odt.name)


# ----------------------------------------------------------------------------
# Params / reference
# ----------------------------------------------------------------------------
def init_params(channel, key):
    """Deterministic parameter init mirroring the PyTorch module's __init__.

    Conv weights ~ U(0.001, 0.01); conv biases use PyTorch's default
    U(-1/sqrt(fan_in), 1/sqrt(fan_in)); BN params use PyTorch defaults
    (gamma=1, beta=0, running_mean=0, running_var=1).
    """
    k1, k2, k3, k4 = jax.random.split(key, 4)
    bound = 1.0 / jnp.sqrt(channel)
    return {
        "conv1_w": jax.random.uniform(k1, (channel, channel), jnp.float32, 0.001, 0.01),
        "conv1_b": jax.random.uniform(k2, (channel,), jnp.float32, -bound, bound),
        "conv2_w": jax.random.uniform(k3, (channel, channel), jnp.float32, 0.001, 0.01),
        "conv2_b": jax.random.uniform(k4, (channel,), jnp.float32, -bound, bound),
        "bn1_gamma": jnp.ones((channel,), jnp.float32),
        "bn1_beta": jnp.zeros((channel,), jnp.float32),
        "bn1_mean": jnp.zeros((channel,), jnp.float32),
        "bn1_var": jnp.ones((channel,), jnp.float32),
        "bn2_gamma": jnp.ones((channel,), jnp.float32),
        "bn2_beta": jnp.zeros((channel,), jnp.float32),
        "bn2_mean": jnp.zeros((channel,), jnp.float32),
        "bn2_var": jnp.ones((channel,), jnp.float32),
    }


def _reference(x, y, params, eps=1e-5):
    """Plain-JAX reference of the same forward for a correctness check."""
    x = x.astype(jnp.float32)
    y = y.astype(jnp.float32)

    def branch(inp, w, b, g, be, mu, var):
        z = jnp.einsum("bchw,oc->bohw", inp, w) + b[None, :, None, None]
        scale = g / jnp.sqrt(var + eps)
        shift = be - mu * scale
        z = z * scale[None, :, None, None] + shift[None, :, None, None]
        return jnp.maximum(z, 0.0)

    a = branch(x, params["conv1_w"], params["conv1_b"], params["bn1_gamma"],
               params["bn1_beta"], params["bn1_mean"], params["bn1_var"])
    b = branch(y, params["conv2_w"], params["conv2_b"], params["bn2_gamma"],
               params["bn2_beta"], params["bn2_mean"], params["bn2_var"])
    return jnp.tanh(a * b)


if __name__ == "__main__":
    B, C, H, W = 2, 32, 16, 16
    key = jax.random.PRNGKey(0)
    kx, ky, kp = jax.random.split(key, 3)
    x = jax.random.normal(kx, (B, C, H, W), jnp.float32)
    y = jax.random.normal(ky, (B, C, H, W), jnp.float32)
    params = init_params(C, kp)

    # f32 path
    out = attention_layer(x, y, params)
    out = jax.block_until_ready(out)
    ref = _reference(x, y, params)
    assert out.shape == (B, C, H, W)
    assert out.dtype == jnp.float32
    assert jnp.max(jnp.abs(out - ref)) < 1e-5, "f32 mismatch vs reference"

    # bf16 I/O path (math still in f32 inside the kernel)
    x_bf = x.astype(jnp.bfloat16)
    y_bf = y.astype(jnp.bfloat16)
    out_bf = attention_layer(x_bf, y_bf, params)
    out_bf = jax.block_until_ready(out_bf)
    ref_bf = _reference(x_bf, y_bf, params)
    assert out_bf.dtype == jnp.bfloat16
    assert jnp.max(jnp.abs(out_bf.astype(jnp.float32) - ref_bf)) < 3e-2, \
        "bf16 mismatch vs reference"

    print("KERNEL_OK")
</pallas_src>

<mosaic_0001>
module attributes {stable_mosaic.version = 11 : i64} {
  func.func @_attention_kernel(%arg0: i32, %arg1: i32, %arg2: memref<1x32x256xf32, #tpu.memory_space<vmem>>, %arg3: memref<1x32x256xf32, #tpu.memory_space<vmem>>, %arg4: memref<32x32xf32, #tpu.memory_space<vmem>>, %arg5: memref<32x1xf32, #tpu.memory_space<vmem>>, %arg6: memref<32x32xf32, #tpu.memory_space<vmem>>, %arg7: memref<32x1xf32, #tpu.memory_space<vmem>>, %arg8: memref<1x32x256xf32, #tpu.memory_space<vmem>>) attributes {dimension_semantics = [#tpu.dimension_semantics<parallel>, #tpu.dimension_semantics<parallel>], iteration_bounds = array<i64: 2, 1>, scalar_prefetch = 0 : i64, scratch_operands = 0 : i64, tpu.core_type = #tpu.core_type<tc>, window_params = [{transform_indices = @transform_0, window_bounds = array<i64: 1, 32, 256>}, {transform_indices = @transform_1, window_bounds = array<i64: 1, 32, 256>}, {pipeline_mode = #tpu.pipeline_mode<synchronous>, transform_indices = @transform_2, window_bounds = array<i64: 32, 32>}, {pipeline_mode = #tpu.pipeline_mode<synchronous>, transform_indices = @transform_3, window_bounds = array<i64: 32, 1>}, {pipeline_mode = #tpu.pipeline_mode<synchronous>, transform_indices = @transform_4, window_bounds = array<i64: 32, 32>}, {pipeline_mode = #tpu.pipeline_mode<synchronous>, transform_indices = @transform_5, window_bounds = array<i64: 32, 1>}, {transform_indices = @transform_6, window_bounds = array<i64: 1, 32, 256>}]} {
    %c0 = arith.constant 0 : index
    %c0_0 = arith.constant 0 : index
    %0 = vector.load %arg4[%c0, %c0_0] : memref<32x32xf32, #tpu.memory_space<vmem>>, vector<32x32xf32>
    %c0_1 = arith.constant 0 : index
    %c0_2 = arith.constant 0 : index
    %1 = vector.load %arg6[%c0_1, %c0_2] : memref<32x32xf32, #tpu.memory_space<vmem>>, vector<32x32xf32>
    %c0_3 = arith.constant 0 : index
    %c0_4 = arith.constant 0 : index
    %2 = vector.load %arg5[%c0_3, %c0_4] : memref<32x1xf32, #tpu.memory_space<vmem>>, vector<32x1xf32>
    %c0_5 = arith.constant 0 : index
    %c0_6 = arith.constant 0 : index
    %3 = vector.load %arg7[%c0_5, %c0_6] : memref<32x1xf32, #tpu.memory_space<vmem>>, vector<32x1xf32>
    %c0_i32 = arith.constant 0 : i32
    %c256_i32 = arith.constant 256 : i32
    %4 = arith.muli %c0_i32, %c256_i32 : i32
    %5 = tpu.assume_multiple %4, 256 : i32
    %c0_7 = arith.constant 0 : index
    %c0_8 = arith.constant 0 : index
    %6 = arith.index_cast %5 : i32 to index
    %7 = vector.load %arg2[%c0_7, %c0_8, %6] : memref<1x32x256xf32, #tpu.memory_space<vmem>>, vector<1x32x256xf32>
    %8 = vector.shape_cast %7 : vector<1x32x256xf32> to vector<32x256xf32>
    %c0_9 = arith.constant 0 : index
    %c0_10 = arith.constant 0 : index
    %9 = arith.index_cast %5 : i32 to index
    %10 = vector.load %arg3[%c0_9, %c0_10, %9] : memref<1x32x256xf32, #tpu.memory_space<vmem>>, vector<1x32x256xf32>
    %11 = vector.shape_cast %10 : vector<1x32x256xf32> to vector<32x256xf32>
    %cst = arith.constant dense<0.000000e+00> : vector<32x256xf32>
    %12 = tpu.matmul %0, %8, %cst {dimension_numbers = #tpu.dot_dimension_numbers<[1], [0], [0], [1], [0, 0, 1, 1], [], []>} : vector<32x32xf32>, vector<32x256xf32>, vector<32x256xf32> -> vector<32x256xf32>
    %13 = vector.broadcast %2 : vector<32x1xf32> to vector<32x256xf32>
    %14 = arith.addf %12, %13 : vector<32x256xf32>
    %cst_11 = arith.constant 0.000000e+00 : f32
    %15 = vector.broadcast %cst_11 : f32 to vector<32x256xf32>
    %16 = arith.maximumf %14, %15 : vector<32x256xf32>
    %cst_12 = arith.constant dense<0.000000e+00> : vector<32x256xf32>
    %17 = tpu.matmul %1, %11, %cst_12 {dimension_numbers = #tpu.dot_dimension_numbers<[1], [0], [0], [1], [0, 0, 1, 1], [], []>} : vector<32x32xf32>, vector<32x256xf32>, vector<32x256xf32> -> vector<32x256xf32>
    %18 = vector.broadcast %3 : vector<32x1xf32> to vector<32x256xf32>
    %19 = arith.addf %17, %18 : vector<32x256xf32>
    %cst_13 = arith.constant 0.000000e+00 : f32
    %20 = vector.broadcast %cst_13 : f32 to vector<32x256xf32>
    %21 = arith.maximumf %19, %20 : vector<32x256xf32>
    %22 = arith.mulf %16, %21 : vector<32x256xf32>
    %23 = math.tanh %22 : vector<32x256xf32>
    %c0_14 = arith.constant 0 : index
    %c0_15 = arith.constant 0 : index
    %24 = arith.index_cast %5 : i32 to index
    %25 = vector.load %arg8[%c0_14, %c0_15, %24] : memref<1x32x256xf32, #tpu.memory_space<vmem>>, vector<1x32x256xf32>
    %26 = vector.shape_cast %25 : vector<1x32x256xf32> to vector<32x256xf32>
    %27 = vector.shape_cast %23 : vector<32x256xf32> to vector<1x32x256xf32>
    tpu.vector_store %arg8[%c0_14, %c0_15, %24], %27 {strides = array<i32>} : memref<1x32x256xf32, #tpu.memory_space<vmem>>, vector<1x32x256xf32>,
    %c1_i32 = arith.constant 1 : i32
    return
  }
  func.func @transform_0(%arg0: i32, %arg1: i32) -> (i32, i32, i32) {
    %c0_i32 = arith.constant 0 : i32
    %c0_i32_0 = arith.constant 0 : i32
    return %arg0, %c0_i32, %arg1 : i32, i32, i32
  }
  func.func @transform_1(%arg0: i32, %arg1: i32) -> (i32, i32, i32) {
    %c0_i32 = arith.constant 0 : i32
    %c0_i32_0 = arith.constant 0 : i32
    return %arg0, %c0_i32, %arg1 : i32, i32, i32
  }
  func.func @transform_2(%arg0: i32, %arg1: i32) -> (i32, i32) {
    %c0_i32 = arith.constant 0 : i32
    %c0_i32_0 = arith.constant 0 : i32
    %c0_i32_1 = arith.constant 0 : i32
    return %c0_i32, %c0_i32_0 : i32, i32
  }
  func.func @transform_3(%arg0: i32, %arg1: i32) -> (i32, i32) {
    %c0_i32 = arith.constant 0 : i32
    %c0_i32_0 = arith.constant 0 : i32
    %c0_i32_1 = arith.constant 0 : i32
    return %c0_i32, %c0_i32_0 : i32, i32
  }
  func.func @transform_4(%arg0: i32, %arg1: i32) -> (i32, i32) {
    %c0_i32 = arith.constant 0 : i32
    %c0_i32_0 = arith.constant 0 : i32
    %c0_i32_1 = arith.constant 0 : i32
    return %c0_i32, %c0_i32_0 : i32, i32
  }
  func.func @transform_5(%arg0: i32, %arg1: i32) -> (i32, i32) {
    %c0_i32 = arith.constant 0 : i32
    %c0_i32_0 = arith.constant 0 : i32
    %c0_i32_1 = arith.constant 0 : i32
    return %c0_i32, %c0_i32_0 : i32, i32
  }
  func.func @transform_6(%arg0: i32, %arg1: i32) -> (i32, i32, i32) {
    %c0_i32 = arith.constant 0 : i32
    %c0_i32_0 = arith.constant 0 : i32
    return %arg0, %c0_i32, %arg1 : i32, i32, i32
  }
}

</mosaic_0001>

<bundles_post_ra>
// kernel: _attention_impl.1
= control target key start
LH: loop header
LB: loop body
LE: loop exit
PB: predicated region body
PF: predicated region fallthrough
CT: control target
= control target key end

     0   :  { %s821_s21 = smov 0   ;;  %s823_s22 = smov 0   ;;  %s936_s0 = inlined_call_operand.vmem [shape: f32[2,32,256], index: 0, kind: input, shape index: {}]   ;;  %s937_s1 = inlined_call_operand.vmem [shape: f32[2,32,256], index: 1, kind: input, shape index: {}]   ;;  %s938_s2 = inlined_call_operand.vmem [shape: f32[32,32], index: 2, kind: input, shape index: {}]   ;;  %s939_s3 = inlined_call_operand.vmem [shape: f32[32,1], index: 3, kind: input, shape index: {}]   ;;  %s940_s4 = inlined_call_operand.vmem [shape: f32[32,32], index: 4, kind: input, shape index: {}]   ;;  %s941_s5 = inlined_call_operand.vmem [shape: f32[32,1], index: 5, kind: input, shape index: {}]   ;;  %s942_s6 = inlined_call_operand.vmem [shape: f32[2,32,256], index: 6, kind: output, shape index: {}]  }
   0x1   :  { %s825_s23 = smov 0  }
   0x2 LB: > { %s28_s24 = sadd.s32 1, %s779_s22  ;;  %p689_p0 = scmp.ge.s32.totalorder %s783_s23, 1  ;;  %s783_s23 = sphi %s825_s23, %s16_s23   ;;  %s779_s22 = sphi %s823_s22, %s944_s22   ;;  %s775_s21 = sphi %s821_s21, %s943_s21  }
   0x3   : > { %p30_p1 = scmp.ge.s32.totalorder %s28_s24, 2  ;;  %p250_p2 = scmp.lt.s32.totalorder %s783_s23, 3 }
   0x5   : > { %s946_s24 = smov (%p30_p1, %s28_s24), 0  ;;  %p251_p3 = pnand %p689_p0, %p250_p2 }
   0x6   : > { %p298_p4 = scmp.lt.s32.totalorder (!%p251_p3), %s775_s21, 1 }
   0x7   : > { %254 = sbr.rel (%p251_p3) target bundleno = 196 (0xc4), region = 44 }
   0xc   : > { %v785_v0 = vmov 0   ;;  %v337_v1 = vld [vmem:[%s939_s3 + $0x10] sm:$0xff]  ;;  %v335_v2 = vld [vmem:[%s939_s3] sm:$0xff]  ;;  %s948_s21 = smov (!%p298_p4, %s775_s21), 1  ;;  %vm379_vm0 = vcmask 261120   ;;  %v338_v21 = vld [vmem:[%s939_s3 + $0x18] sm:$0xff] }
   0xd   : > { %743 = vset.pattern.permute.xlu1 %v785_v0  ;;  %742 = vset.pattern.permute.xlu0 %v785_v0  ;;  %s845_s29 = sshll.u32 %s948_s21, 6  ;;  %v327_v19 = vld [vmem:[%s938_s2] sm:$0xff]  ;;  %v336_v22 = vld [vmem:[%s939_s3 + $0x8] sm:$0xff]  ;;  %v342_v26 = vld [vmem:[%s941_s5 + $0x18] sm:$0xff] }
   0xe   : > { %371 = vperm.xlu1 %743, %v337_v1   ;;  %361 = vperm.xlu0 %742, %v335_v2   ;;  %s305_s8 = scalar_lea.vmem %s936_s0, %s845_s29  ;;  %s315_s11 = scalar_lea.vmem %s937_s1, %s845_s29  ;;  %v331_v20 = vld [vmem:[%s940_s4] sm:$0xff]  ;;  %v328_v24 = vld [vmem:[%s938_s2 + $0x8] sm:$0xff]  ;;  %v341_v27 = vld [vmem:[%s941_s5 + $0x10] sm:$0xff] }
   0xf   : > { %744 = vset.pattern.permute.xlu2 %v785_v0  ;;  %v349_v3 = vld [vmem:[%s305_s8 + $0x30] sm:$0xff]  ;;  %v350_v4 = vld [vmem:[%s305_s8 + $0x38] sm:$0xff]  ;;  %v347_v5 = vld [vmem:[%s305_s8 + $0x20] sm:$0xff]  ;;  %s917_s25 = scalar_lea.vmem %s942_s6, %s845_s29 }
  0x10   : > { %404 = vmatpush.msra.mxu0 %v349_v3  ;;  %433 = vmatpush.msra.mxu1 %v350_v4  ;;  %v357_v6 = vld [vmem:[%s315_s11 + $0x30] sm:$0xff]  ;;  %v358_v7 = vld [vmem:[%s315_s11 + $0x38] sm:$0xff]  ;;  %v348_v8 = vld [vmem:[%s305_s8 + $0x28] sm:$0xff] }
  0x11   : > { %502 = vmatpush.msra.mxu2 %v357_v6  ;;  %531 = vmatpush.msra.mxu3 %v358_v7  ;;  %v355_v9 = vld [vmem:[%s315_s11 + $0x20] sm:$0xff]  ;;  %v356_v10 = vld [vmem:[%s315_s11 + $0x28] sm:$0xff]  ;;  %v345_v11 = vld [vmem:[%s305_s8 + $0x10] sm:$0xff] }
  0x12   : > { %405 = vmatpush.msra.mxu0 %v347_v5  ;;  %434 = vmatpush.msra.mxu1 %v348_v8  ;;  %v346_v12 = vld [vmem:[%s305_s8 + $0x18] sm:$0xff]  ;;  %v353_v13 = vld [vmem:[%s315_s11 + $0x10] sm:$0xff]  ;;  %v343_v15 = vld [vmem:[%s305_s8] sm:$0xff] }
  0x13   : > { %v354_v14 = vld [vmem:[%s315_s11 + $0x18] sm:$0xff]  ;;  %503 = vmatpush.msra.mxu2 %v355_v9  ;;  %532 = vmatpush.msra.mxu3 %v356_v10  ;;  %v344_v16 = vld [vmem:[%s305_s8 + $0x8] sm:$0xff]  ;;  %v351_v17 = vld [vmem:[%s315_s11] sm:$0xff] }
  0x14   : > { %406 = vmatpush.msra.mxu0 %v345_v11  ;;  %435 = vmatpush.msra.mxu1 %v346_v12  ;;  %v352_v18 = vld [vmem:[%s315_s11 + $0x8] sm:$0xff]  ;;  %v339_v23 = vld [vmem:[%s941_s5] sm:$0xff]  ;;  %v329_v29 = vld [vmem:[%s938_s2 + $0x10] sm:$0xff] }
  0x15   : > { %504 = vmatpush.msra.mxu2 %v353_v13  ;;  %533 = vmatpush.msra.mxu3 %v354_v14  ;;  %v332_v25 = vld [vmem:[%s940_s4 + $0x8] sm:$0xff]  ;;  %v333_v30 = vld [vmem:[%s940_s4 + $0x10] sm:$0xff]  ;;  %v330_v31 = vld [vmem:[%s938_s2 + $0x18] sm:$0xff] }
  0x16   : > { %407 = vmatpush.msra.mxu0 %v343_v15  ;;  %436 = vmatpush.msra.mxu1 %v344_v16  ;;  %v340_v28 = vld [vmem:[%s941_s5 + $0x8] sm:$0xff]  ;;  %v334_v32 = vld [vmem:[%s940_s4 + $0x18] sm:$0xff] }
  0x17   : > { %505 = vmatpush.msra.mxu2 %v351_v17  ;;  %534 = vmatpush.msra.mxu3 %v352_v18 }
  0x18   : > { %696 = vmatmul.msk.f32.vlgmr.msra.gmra.mxu0 %vm379_vm0, %v327_v19  ;;  %700 = vmatmul.msk.f32.vlgmr.msra.gmra.mxu1 %vm379_vm0, %v327_v19 }
  0x19   : > { %704 = vmatmul.msk.f32.vlgmr.msra.gmra.mxu2 %vm379_vm0, %v331_v20  ;;  %708 = vmatmul.msk.f32.vlgmr.msra.gmra.mxu3 %vm379_vm0, %v331_v20 }
  0x1a   : > { %376 = vperm.xlu1 %743, %v338_v21   ;;  %366 = vperm.xlu0 %742, %v336_v22  }
  0x1b   : > { %460 = vperm.xlu2 %744, %v339_v23  }
  0x20   : > { %697 = vmatmul.msk.f32.gmra.mxu0 %vm379_vm0, %v328_v24  ;;  %701 = vmatmul.msk.f32.gmra.mxu1 %vm379_vm0, %v328_v24 }
  0x21   : > { %705 = vmatmul.msk.f32.gmra.mxu2 %vm379_vm0, %v332_v25  ;;  %709 = vmatmul.msk.f32.gmra.mxu3 %vm379_vm0, %v332_v25 }
  0x22   : > { %475 = vperm.xlu1 %743, %v342_v26   ;;  %470 = vperm.xlu0 %742, %v341_v27  }
  0x23   : > { %465 = vperm.xlu2 %744, %v340_v28  }
  0x28   : > { %698 = vmatmul.msk.f32.gmra.mxu0 %vm379_vm0, %v329_v29  ;;  %702 = vmatmul.msk.f32.gmra.mxu1 %vm379_vm0, %v329_v29 }
  0x29   : > { %706 = vmatmul.msk.f32.gmra.mxu2 %vm379_vm0, %v333_v30  ;;  %710 = vmatmul.msk.f32.gmra.mxu3 %vm379_vm0, %v333_v30 }
  0x30   : > { %699 = vmatmul.msk.f32.gmra.mxu0 %vm379_vm0, %v330_v31  ;;  %703 = vmatmul.msk.f32.gmra.mxu1 %vm379_vm0, %v330_v31 }
  0x31   : > { %707 = vmatmul.msk.f32.gmra.mxu2 %vm379_vm0, %v334_v32  ;;  %711 = vmatmul.msk.f32.gmra.mxu3 %vm379_vm0, %v334_v32 }
  0x75   : > { %v461_v36 = vpop.permute.xlu2 %460 }
  0x7d   : > { %v466_v55 = vpop.permute.xlu2 %465 }
  0x80   : > { %v362_v35 = vpop.permute.xlu0 %361  ;;  %v372_v47 = vpop.permute.xlu1 %371 }
  0x8c   : > { %v367_v50 = vpop.permute.xlu0 %366  ;;  %v377_v3 = vpop.permute.xlu1 %376 }
  0x94   : > { %v471_v7 = vpop.permute.xlu0 %470  ;;  %v476_v24 = vpop.permute.xlu1 %475 }
  0x95   : > { %v409_v33 = vpop.f32.mrf.mxu0  ;;  %v438_v34 = vpop.f32.mrf.mxu1 }
  0x96   : > { %v410_v37 = vadd.f32 %v409_v33, %v362_v35  ;;  %v439_v38 = vadd.f32 %v438_v34, %v362_v35 }
  0x98   : > { %v450_v41 = vmax.f32 %v410_v37, 0.0  ;;  %v451_v42 = vmax.f32 %v439_v38, 0.0 }
  0x9c   : > { %v507_v39 = vpop.f32.mrf.mxu2  ;;  %v536_v40 = vpop.f32.mrf.mxu3 }
  0x9d   : > { %v508_v43 = vadd.f32 %v507_v39, %v461_v36  ;;  %v537_v44 = vadd.f32 %v536_v40, %v461_v36  ;;  %v412_v45 = vpop.f32.mrf.mxu0  ;;  %v441_v46 = vpop.f32.mrf.mxu1 }
  0x9e   : > { %v413_v53 = vadd.f32 %v412_v45, %v367_v50  ;;  %v442_v54 = vadd.f32 %v441_v46, %v367_v50 }
  0x9f   : > { %v548_v48 = vmax.f32 %v508_v43, 0.0  ;;  %v549_v49 = vmax.f32 %v537_v44, 0.0 }
  0xa0   : > { %v452_v58 = vmax.f32 %v413_v53, 0.0  ;;  %v453_v59 = vmax.f32 %v442_v54, 0.0 }
  0xa1   : > { %v556_v51 = vmul.f32 %v548_v48, %v450_v41  ;;  %v557_v52 = vmul.f32 %v549_v49, %v451_v42 }
  0xa3   : > { %745 = vtanh.f32 %v556_v51 }
  0xa4   : > { %747 = vtanh.f32 %v557_v52  ;;  %v510_v56 = vpop.f32.mrf.mxu2  ;;  %v539_v57 = vpop.f32.mrf.mxu3 }
  0xa5   : > { %v511_v60 = vadd.f32 %v510_v56, %v466_v55  ;;  %v540_v61 = vadd.f32 %v539_v57, %v466_v55  ;;  %v415_v62 = vpop.f32.mrf.mxu0  ;;  %v444_v63 = vpop.f32.mrf.mxu1 }
  0xa6   : > { %v416_v8 = vadd.f32 %v415_v62, %v372_v47  ;;  %v445_v9 = vadd.f32 %v444_v63, %v372_v47 }
  0xa7   : > { %v550_v0 = vmax.f32 %v511_v60, 0.0  ;;  %v551_v1 = vmax.f32 %v540_v61, 0.0 }
  0xa8   : > { %v454_v14 = vmax.f32 %v416_v8, 0.0  ;;  %v455_v15 = vmax.f32 %v445_v9, 0.0 }
  0xa9   : > { %v746_v2 = vpop.eup %745  ;;  %v558_v4 = vmul.f32 %v550_v0, %v452_v58  ;;  %v559_v5 = vmul.f32 %v551_v1, %v453_v59 }
  0xaa   : > { %v748_v6 = vpop.eup %747  ;;  %572 = vst [vmem:[%s917_s25] sm:$0xff] %v746_v2 }
  0xab   : > { %573 = vst [vmem:[%s917_s25 + $0x8] sm:$0xff] %v748_v6  ;;  %749 = vtanh.f32 %v558_v4 }
  0xac   : > { %751 = vtanh.f32 %v559_v5  ;;  %v513_v10 = vpop.f32.mrf.mxu2  ;;  %v542_v11 = vpop.f32.mrf.mxu3 }
  0xad   : > { %v514_v12 = vadd.f32 %v513_v10, %v471_v7  ;;  %v543_v13 = vadd.f32 %v542_v11, %v471_v7  ;;  %v418_v18 = vpop.f32.mrf.mxu0  ;;  %v447_v19 = vpop.f32.mrf.mxu1 }
  0xae   : > { %v419_v25 = vadd.f32 %v418_v18, %v377_v3  ;;  %v448_v26 = vadd.f32 %v447_v19, %v377_v3 }
  0xaf   : > { %v552_v16 = vmax.f32 %v514_v12, 0.0  ;;  %v553_v17 = vmax.f32 %v543_v13, 0.0 }
  0xb0   : > { %v456_v31 = vmax.f32 %v419_v25, 0.0  ;;  %v457_v32 = vmax.f32 %v448_v26, 0.0 }
  0xb1   : > { %v750_v20 = vpop.eup %749  ;;  %v560_v21 = vmul.f32 %v552_v16, %v454_v14  ;;  %v561_v22 = vmul.f32 %v553_v17, %v455_v15 }
  0xb2   : > { %v752_v23 = vpop.eup %751  ;;  %574 = vst [vmem:[%s917_s25 + $0x10] sm:$0xff] %v750_v20 }
  0xb3   : > { %575 = vst [vmem:[%s917_s25 + $0x18] sm:$0xff] %v752_v23  ;;  %753 = vtanh.f32 %v560_v21 }
  0xb4   : > { %755 = vtanh.f32 %v561_v22  ;;  %v516_v27 = vpop.f32.mrf.mxu2  ;;  %v545_v28 = vpop.f32.mrf.mxu3 }
  0xb5   : > { %v517_v29 = vadd.f32 %v516_v27, %v476_v24  ;;  %v546_v30 = vadd.f32 %v545_v28, %v476_v24 }
  0xb7   : > { %v554_v33 = vmax.f32 %v517_v29, 0.0  ;;  %v555_v34 = vmax.f32 %v546_v30, 0.0 }
  0xb9   : > { %v754_v35 = vpop.eup %753  ;;  %v562_v36 = vmul.f32 %v554_v33, %v456_v31  ;;  %v563_v37 = vmul.f32 %v555_v34, %v457_v32 }
  0xba   : > { %v756_v38 = vpop.eup %755  ;;  %576 = vst [vmem:[%s917_s25 + $0x20] sm:$0xff] %v754_v35 }
  0xbb   : > { %577 = vst [vmem:[%s917_s25 + $0x28] sm:$0xff] %v756_v38  ;;  %757 = vtanh.f32 %v562_v36 }
  0xbc   : > { %759 = vtanh.f32 %v563_v37 }
  0xc1   : > { %v758_v39 = vpop.eup %757 }
  0xc2   : > { %v760_v40 = vpop.eup %759  ;;  %578 = vst [vmem:[%s917_s25 + $0x30] sm:$0xff] %v758_v39 }
  0xc3   : > { %579 = vst [vmem:[%s917_s25 + $0x38] sm:$0xff] %v760_v40 }
  0xc4 PF: > { %s16_s23 = sadd.s32 1, %s783_s23   ;;  %s943_s21 = smov %s779_s22 }
  0xc5   : > { %p13_p5 = scmp.ge.s32.totalorder %s16_s23, 4   ;;  %s944_s22 = smov %s946_s24 }
  0xc7   :  { %15 = sbr.rel (!%p13_p5) target bundleno = 2 (0x2), region = 77 }

</bundles_post_ra>
